<compile_context>
chip_gen: v7x
topology: tpu7x:2x2x1
jax: 0.10.0
libtpu: 0.0.40
codegen_flags: <defaults>
</compile_context>

<pallas_src>
import jax
import jax.numpy as jnp
from jax import lax
from jax.experimental import pallas as pl
from jax.experimental.pallas import tpu as pltpu

_LANES = 128


def _cdiv(a, b):
    return (a + b - 1) // b


def _round_up(n, m):
    return ((n + m - 1) // m) * m


def fitter_kernel(w1_ref, b1_ref, w2_ref, b2_ref, x_ref, y_ref):
    # w1_ref: (H,)  SMEM   fc1.weight (in_features = 1), flattened
    # b1_ref: (H,)  SMEM   fc1.bias
    # w2_ref: (H,)  SMEM   fc2.weight (out_features = 1), flattened
    # b2_ref: (1,)  SMEM   fc2.bias
    # x_ref : (R_TILE, 128) VMEM  input batch tile (batch on sublanes+lanes)
    # y_ref : (R_TILE, 128) VMEM  output batch tile
    x = x_ref[...]                                   # (R_TILE, 128) f32
    H = w1_ref.shape[0]

    # fc2 bias folded into the accumulator init.
    acc0 = jnp.full(x.shape, b2_ref[0], dtype=jnp.float32)

    # Accumulate over hidden units: acc += w2[k] * tanh(w1[k]*x + b1[k]).
    # Unrolled fixed-trip loop keeps the live set to ~3 tiles (no spills)
    # and gives the LLO scheduler visibility across iterations.
    def body(k, acc):
        pre = w1_ref[k] * x + b1_ref[k]              # scalar*vreg + scalar (VPU)
        return acc + w2_ref[k] * jnp.tanh(pre)       # tanh on EUP, mul/add on VPU

    y_ref[...] = lax.fori_loop(0, H, body, acc0, unroll=True)


def _fitter_xla(x, w1, b1, w2, b2):
    """Plain XLA path for tiny batches (launch overhead would dominate)."""
    x = x.astype(jnp.float32)
    h = jnp.tanh(x @ w1.T.astype(jnp.float32) + b1.astype(jnp.float32))
    return h @ w2.T.astype(jnp.float32) + b2.astype(jnp.float32)


def _fitter_pallas(x, w1, b1, w2, b2, *, max_rows_tile=512):
    B = x.shape[0]
    H = w1.shape[0]

    # 2-D batch slab: rows of 128 lanes, rows padded to a multiple of 8,
    # split into near-equal tiles of at most max_rows_tile rows.
    rows = _cdiv(max(B, 1), _LANES)
    rows_pad8 = _round_up(rows, 8)
    num_tiles = _cdiv(rows_pad8, max_rows_tile)
    r_tile = _round_up(_cdiv(rows_pad8, num_tiles), 8)
    rows_padded = num_tiles * r_tile
    n_padded = rows_padded * _LANES

    x_flat = x.reshape(B).astype(jnp.float32)
    x_slab = jnp.pad(x_flat, (0, n_padded - B)).reshape(rows_padded, _LANES)

    w1_s = w1.reshape(H).astype(jnp.float32)
    b1_s = b1.reshape(H).astype(jnp.float32)
    w2_s = w2.reshape(H).astype(jnp.float32)
    b2_s = b2.reshape(1).astype(jnp.float32)

    y_slab = pl.pallas_call(
        fitter_kernel,
        out_shape=jax.ShapeDtypeStruct((rows_padded, _LANES), jnp.float32),
        grid=(num_tiles,),
        in_specs=[
            # Weights / biases: small flat arrays, resident in SMEM.
            pl.BlockSpec(memory_space=pltpu.MemorySpace.SMEM),   # w1 (H,)
            pl.BlockSpec(memory_space=pltpu.MemorySpace.SMEM),   # b1 (H,)
            pl.BlockSpec(memory_space=pltpu.MemorySpace.SMEM),   # w2 (H,)
            pl.BlockSpec(memory_space=pltpu.MemorySpace.SMEM),   # b2 (1,)
            # x: tiled over batch rows, lane-dense.
            pl.BlockSpec((r_tile, _LANES), lambda i: (i, 0)),
        ],
        out_specs=pl.BlockSpec((r_tile, _LANES), lambda i: (i, 0)),
        compiler_params=pltpu.CompilerParams(
            dimension_semantics=("parallel",)),
    )(w1_s, b1_s, w2_s, b2_s, x_slab)

    return y_slab.reshape(-1)[:B].reshape(B, 1)


def fitter_forward(x, w1, b1, w2, b2, *, max_rows_tile=512,
                   min_pallas_batch=16384):
    """Forward pass matching the PyTorch module.

    x : (B, 1) float32
    w1: (H, 1) float32   (fc1.weight, PyTorch layout)
    b1: (H,)   float32   (fc1.bias)
    w2: (1, H) float32   (fc2.weight, PyTorch layout)
    b2: (1,)   float32   (fc2.bias)
    returns y: (B, 1) float32

    Batches below `min_pallas_batch` use plain XLA (kernel launch overhead
    dominates there); pass min_pallas_batch=0 to force the Pallas kernel.
    """
    B = x.shape[0]
    if B < min_pallas_batch:
        return _fitter_xla(x, w1, b1, w2, b2)
    return _fitter_pallas(x, w1, b1, w2, b2, max_rows_tile=max_rows_tile)


def init_params(key, num_hidden):
    """Deterministic init mirroring torch.nn.Linear default U(-1/sqrt(fan_in), +)."""
    k1, k2, k3, k4 = jax.random.split(key, 4)
    bound1 = 1.0  # fan_in = 1
    w1 = jax.random.uniform(k1, (num_hidden, 1), jnp.float32, -bound1, bound1)
    b1 = jax.random.uniform(k2, (num_hidden,), jnp.float32, -bound1, bound1)
    bound2 = 1.0 / jnp.sqrt(num_hidden)
    w2 = jax.random.uniform(k3, (1, num_hidden), jnp.float32, -bound2, bound2)
    b2 = jax.random.uniform(k4, (1,), jnp.float32, -bound2, bound2)
    return w1, b1, w2, b2


def _reference(x, w1, b1, w2, b2):
    return jnp.tanh(x @ w1.T + b1) @ w2.T + b2


if __name__ == "__main__":
    num_hidden = 32

    key = jax.random.PRNGKey(0)
    k_params, k_x1, k_x2 = jax.random.split(key, 3)
    w1, b1, w2, b2 = init_params(k_params, num_hidden)

    # Small shape matching the module's intended use -- force the Pallas path.
    x_small = jax.random.normal(k_x1, (8, 1), jnp.float32)
    y_small = fitter_forward(x_small, w1, b1, w2, b2, min_pallas_batch=0)
    jax.block_until_ready(y_small)
    assert y_small.shape == (8, 1)
    assert jnp.allclose(y_small, _reference(x_small, w1, b1, w2, b2),
                        atol=1e-5, rtol=1e-5)

    # Larger, non-tile-aligned batch exercising the 2-D slab / padding path.
    x_big = jax.random.normal(k_x2, (4100, 1), jnp.float32)
    y_big = fitter_forward(x_big, w1, b1, w2, b2, min_pallas_batch=0)
    jax.block_until_ready(y_big)
    assert y_big.shape == (4100, 1)
    assert jnp.allclose(y_big, _reference(x_big, w1, b1, w2, b2),
                        atol=1e-5, rtol=1e-5)

    # Default dispatch: tiny batch goes through the XLA fallback.
    y_fb = fitter_forward(x_small, w1, b1, w2, b2)
    jax.block_until_ready(y_fb)
    assert jnp.allclose(y_fb, _reference(x_small, w1, b1, w2, b2),
                        atol=1e-5, rtol=1e-5)

    print("KERNEL_OK")
</pallas_src>

<mosaic_0001>
module attributes {stable_mosaic.version = 11 : i64} {
  func.func @fitter_kernel(%arg0: i32, %arg1: memref<32xf32, #tpu.memory_space<smem>>, %arg2: memref<32xf32, #tpu.memory_space<smem>>, %arg3: memref<32xf32, #tpu.memory_space<smem>>, %arg4: memref<1xf32, #tpu.memory_space<smem>>, %arg5: memref<8x128xf32, #tpu.memory_space<vmem>>, %arg6: memref<8x128xf32, #tpu.memory_space<vmem>>) attributes {dimension_semantics = [#tpu.dimension_semantics<parallel>], iteration_bounds = array<i64: 1>, scalar_prefetch = 0 : i64, scratch_operands = 0 : i64, tpu.core_type = #tpu.core_type<tc>, window_params = [{transform_indices = @transform_0, window_bounds = array<i64: 32>}, {transform_indices = @transform_1, window_bounds = array<i64: 32>}, {transform_indices = @transform_2, window_bounds = array<i64: 32>}, {transform_indices = @transform_3, window_bounds = array<i64: 1>}, {transform_indices = @transform_4, window_bounds = array<i64: 8, 128>}, {transform_indices = @transform_5, window_bounds = array<i64: 8, 128>}]} {
    %c0 = arith.constant 0 : index
    %c0_0 = arith.constant 0 : index
    %0 = vector.load %arg5[%c0, %c0_0] : memref<8x128xf32, #tpu.memory_space<vmem>>, vector<8x128xf32>
    %c0_1 = arith.constant 0 : index
    %1 = memref.load %arg4[%c0_1] : memref<1xf32, #tpu.memory_space<smem>>
    %2 = vector.broadcast %1 : f32 to vector<8x128xf32>
    %c0_i32 = arith.constant 0 : i32
    %3 = arith.index_cast %c0_i32 : i32 to index
    %4 = memref.load %arg1[%3] : memref<32xf32, #tpu.memory_space<smem>>
    %5 = vector.broadcast %4 : f32 to vector<8x128xf32>
    %6 = arith.mulf %5, %0 : vector<8x128xf32>
    %7 = arith.index_cast %c0_i32 : i32 to index
    %8 = memref.load %arg2[%7] : memref<32xf32, #tpu.memory_space<smem>>
    %9 = vector.broadcast %8 : f32 to vector<8x128xf32>
    %10 = arith.addf %6, %9 : vector<8x128xf32>
    %11 = arith.index_cast %c0_i32 : i32 to index
    %12 = memref.load %arg3[%11] : memref<32xf32, #tpu.memory_space<smem>>
    %13 = math.tanh %10 : vector<8x128xf32>
    %14 = vector.broadcast %12 : f32 to vector<8x128xf32>
    %15 = arith.mulf %14, %13 : vector<8x128xf32>
    %16 = arith.addf %2, %15 : vector<8x128xf32>
    %c1_i32 = arith.constant 1 : i32
    %17 = arith.index_cast %c1_i32 : i32 to index
    %18 = memref.load %arg1[%17] : memref<32xf32, #tpu.memory_space<smem>>
    %19 = vector.broadcast %18 : f32 to vector<8x128xf32>
    %20 = arith.mulf %19, %0 : vector<8x128xf32>
    %21 = arith.index_cast %c1_i32 : i32 to index
    %22 = memref.load %arg2[%21] : memref<32xf32, #tpu.memory_space<smem>>
    %23 = vector.broadcast %22 : f32 to vector<8x128xf32>
    %24 = arith.addf %20, %23 : vector<8x128xf32>
    %25 = arith.index_cast %c1_i32 : i32 to index
    %26 = memref.load %arg3[%25] : memref<32xf32, #tpu.memory_space<smem>>
    %27 = math.tanh %24 : vector<8x128xf32>
    %28 = vector.broadcast %26 : f32 to vector<8x128xf32>
    %29 = arith.mulf %28, %27 : vector<8x128xf32>
    %30 = arith.addf %16, %29 : vector<8x128xf32>
    %c2_i32 = arith.constant 2 : i32
    %31 = arith.index_cast %c2_i32 : i32 to index
    %32 = memref.load %arg1[%31] : memref<32xf32, #tpu.memory_space<smem>>
    %33 = vector.broadcast %32 : f32 to vector<8x128xf32>
    %34 = arith.mulf %33, %0 : vector<8x128xf32>
    %35 = arith.index_cast %c2_i32 : i32 to index
    %36 = memref.load %arg2[%35] : memref<32xf32, #tpu.memory_space<smem>>
    %37 = vector.broadcast %36 : f32 to vector<8x128xf32>
    %38 = arith.addf %34, %37 : vector<8x128xf32>
    %39 = arith.index_cast %c2_i32 : i32 to index
    %40 = memref.load %arg3[%39] : memref<32xf32, #tpu.memory_space<smem>>
    %41 = math.tanh %38 : vector<8x128xf32>
    %42 = vector.broadcast %40 : f32 to vector<8x128xf32>
    %43 = arith.mulf %42, %41 : vector<8x128xf32>
    %44 = arith.addf %30, %43 : vector<8x128xf32>
    %c3_i32 = arith.constant 3 : i32
    %45 = arith.index_cast %c3_i32 : i32 to index
    %46 = memref.load %arg1[%45] : memref<32xf32, #tpu.memory_space<smem>>
    %47 = vector.broadcast %46 : f32 to vector<8x128xf32>
    %48 = arith.mulf %47, %0 : vector<8x128xf32>
    %49 = arith.index_cast %c3_i32 : i32 to index
    %50 = memref.load %arg2[%49] : memref<32xf32, #tpu.memory_space<smem>>
    %51 = vector.broadcast %50 : f32 to vector<8x128xf32>
    %52 = arith.addf %48, %51 : vector<8x128xf32>
    %53 = arith.index_cast %c3_i32 : i32 to index
    %54 = memref.load %arg3[%53] : memref<32xf32, #tpu.memory_space<smem>>
    %55 = math.tanh %52 : vector<8x128xf32>
    %56 = vector.broadcast %54 : f32 to vector<8x128xf32>
    %57 = arith.mulf %56, %55 : vector<8x128xf32>
    %58 = arith.addf %44, %57 : vector<8x128xf32>
    %c4_i32 = arith.constant 4 : i32
    %59 = arith.index_cast %c4_i32 : i32 to index
    %60 = memref.load %arg1[%59] : memref<32xf32, #tpu.memory_space<smem>>
    %61 = vector.broadcast %60 : f32 to vector<8x128xf32>
    %62 = arith.mulf %61, %0 : vector<8x128xf32>
    %63 = arith.index_cast %c4_i32 : i32 to index
    %64 = memref.load %arg2[%63] : memref<32xf32, #tpu.memory_space<smem>>
    %65 = vector.broadcast %64 : f32 to vector<8x128xf32>
    %66 = arith.addf %62, %65 : vector<8x128xf32>
    %67 = arith.index_cast %c4_i32 : i32 to index
    %68 = memref.load %arg3[%67] : memref<32xf32, #tpu.memory_space<smem>>
    %69 = math.tanh %66 : vector<8x128xf32>
    %70 = vector.broadcast %68 : f32 to vector<8x128xf32>
    %71 = arith.mulf %70, %69 : vector<8x128xf32>
    %72 = arith.addf %58, %71 : vector<8x128xf32>
    %c5_i32 = arith.constant 5 : i32
    %73 = arith.index_cast %c5_i32 : i32 to index
    %74 = memref.load %arg1[%73] : memref<32xf32, #tpu.memory_space<smem>>
    %75 = vector.broadcast %74 : f32 to vector<8x128xf32>
    %76 = arith.mulf %75, %0 : vector<8x128xf32>
    %77 = arith.index_cast %c5_i32 : i32 to index
    %78 = memref.load %arg2[%77] : memref<32xf32, #tpu.memory_space<smem>>
    %79 = vector.broadcast %78 : f32 to vector<8x128xf32>
    %80 = arith.addf %76, %79 : vector<8x128xf32>
    %81 = arith.index_cast %c5_i32 : i32 to index
    %82 = memref.load %arg3[%81] : memref<32xf32, #tpu.memory_space<smem>>
    %83 = math.tanh %80 : vector<8x128xf32>
    %84 = vector.broadcast %82 : f32 to vector<8x128xf32>
    %85 = arith.mulf %84, %83 : vector<8x128xf32>
    %86 = arith.addf %72, %85 : vector<8x128xf32>
    %c6_i32 = arith.constant 6 : i32
    %87 = arith.index_cast %c6_i32 : i32 to index
    %88 = memref.load %arg1[%87] : memref<32xf32, #tpu.memory_space<smem>>
    %89 = vector.broadcast %88 : f32 to vector<8x128xf32>
    %90 = arith.mulf %89, %0 : vector<8x128xf32>
    %91 = arith.index_cast %c6_i32 : i32 to index
    %92 = memref.load %arg2[%91] : memref<32xf32, #tpu.memory_space<smem>>
    %93 = vector.broadcast %92 : f32 to vector<8x128xf32>
    %94 = arith.addf %90, %93 : vector<8x128xf32>
    %95 = arith.index_cast %c6_i32 : i32 to index
    %96 = memref.load %arg3[%95] : memref<32xf32, #tpu.memory_space<smem>>
    %97 = math.tanh %94 : vector<8x128xf32>
    %98 = vector.broadcast %96 : f32 to vector<8x128xf32>
    %99 = arith.mulf %98, %97 : vector<8x128xf32>
    %100 = arith.addf %86, %99 : vector<8x128xf32>
    %c7_i32 = arith.constant 7 : i32
    %101 = arith.index_cast %c7_i32 : i32 to index
    %102 = memref.load %arg1[%101] : memref<32xf32, #tpu.memory_space<smem>>
    %103 = vector.broadcast %102 : f32 to vector<8x128xf32>
    %104 = arith.mulf %103, %0 : vector<8x128xf32>
    %105 = arith.index_cast %c7_i32 : i32 to index
    %106 = memref.load %arg2[%105] : memref<32xf32, #tpu.memory_space<smem>>
    %107 = vector.broadcast %106 : f32 to vector<8x128xf32>
    %108 = arith.addf %104, %107 : vector<8x128xf32>
    %109 = arith.index_cast %c7_i32 : i32 to index
    %110 = memref.load %arg3[%109] : memref<32xf32, #tpu.memory_space<smem>>
    %111 = math.tanh %108 : vector<8x128xf32>
    %112 = vector.broadcast %110 : f32 to vector<8x128xf32>
    %113 = arith.mulf %112, %111 : vector<8x128xf32>
    %114 = arith.addf %100, %113 : vector<8x128xf32>
    %c8_i32 = arith.constant 8 : i32
    %115 = arith.index_cast %c8_i32 : i32 to index
    %116 = memref.load %arg1[%115] : memref<32xf32, #tpu.memory_space<smem>>
    %117 = vector.broadcast %116 : f32 to vector<8x128xf32>
    %118 = arith.mulf %117, %0 : vector<8x128xf32>
    %119 = arith.index_cast %c8_i32 : i32 to index
    %120 = memref.load %arg2[%119] : memref<32xf32, #tpu.memory_space<smem>>
    %121 = vector.broadcast %120 : f32 to vector<8x128xf32>
    %122 = arith.addf %118, %121 : vector<8x128xf32>
    %123 = arith.index_cast %c8_i32 : i32 to index
    %124 = memref.load %arg3[%123] : memref<32xf32, #tpu.memory_space<smem>>
    %125 = math.tanh %122 : vector<8x128xf32>
    %126 = vector.broadcast %124 : f32 to vector<8x128xf32>
    %127 = arith.mulf %126, %125 : vector<8x128xf32>
    %128 = arith.addf %114, %127 : vector<8x128xf32>
    %c9_i32 = arith.constant 9 : i32
    %129 = arith.index_cast %c9_i32 : i32 to index
    %130 = memref.load %arg1[%129] : memref<32xf32, #tpu.memory_space<smem>>
    %131 = vector.broadcast %130 : f32 to vector<8x128xf32>
    %132 = arith.mulf %131, %0 : vector<8x128xf32>
    %133 = arith.index_cast %c9_i32 : i32 to index
    %134 = memref.load %arg2[%133] : memref<32xf32, #tpu.memory_space<smem>>
    %135 = vector.broadcast %134 : f32 to vector<8x128xf32>
    %136 = arith.addf %132, %135 : vector<8x128xf32>
    %137 = arith.index_cast %c9_i32 : i32 to index
    %138 = memref.load %arg3[%137] : memref<32xf32, #tpu.memory_space<smem>>
    %139 = math.tanh %136 : vector<8x128xf32>
    %140 = vector.broadcast %138 : f32 to vector<8x128xf32>
    %141 = arith.mulf %140, %139 : vector<8x128xf32>
    %142 = arith.addf %128, %141 : vector<8x128xf32>
    %c10_i32 = arith.constant 10 : i32
    %143 = arith.index_cast %c10_i32 : i32 to index
    %144 = memref.load %arg1[%143] : memref<32xf32, #tpu.memory_space<smem>>
    %145 = vector.broadcast %144 : f32 to vector<8x128xf32>
    %146 = arith.mulf %145, %0 : vector<8x128xf32>
    %147 = arith.index_cast %c10_i32 : i32 to index
    %148 = memref.load %arg2[%147] : memref<32xf32, #tpu.memory_space<smem>>
    %149 = vector.broadcast %148 : f32 to vector<8x128xf32>
    %150 = arith.addf %146, %149 : vector<8x128xf32>
    %151 = arith.index_cast %c10_i32 : i32 to index
    %152 = memref.load %arg3[%151] : memref<32xf32, #tpu.memory_space<smem>>
    %153 = math.tanh %150 : vector<8x128xf32>
    %154 = vector.broadcast %152 : f32 to vector<8x128xf32>
    %155 = arith.mulf %154, %153 : vector<8x128xf32>
    %156 = arith.addf %142, %155 : vector<8x128xf32>
    %c11_i32 = arith.constant 11 : i32
    %157 = arith.index_cast %c11_i32 : i32 to index
    %158 = memref.load %arg1[%157] : memref<32xf32, #tpu.memory_space<smem>>
    %159 = vector.broadcast %158 : f32 to vector<8x128xf32>
    %160 = arith.mulf %159, %0 : vector<8x128xf32>
    %161 = arith.index_cast %c11_i32 : i32 to index
    %162 = memref.load %arg2[%161] : memref<32xf32, #tpu.memory_space<smem>>
    %163 = vector.broadcast %162 : f32 to vector<8x128xf32>
    %164 = arith.addf %160, %163 : vector<8x128xf32>
    %165 = arith.index_cast %c11_i32 : i32 to index
    %166 = memref.load %arg3[%165] : memref<32xf32, #tpu.memory_space<smem>>
    %167 = math.tanh %164 : vector<8x128xf32>
    %168 = vector.broadcast %166 : f32 to vector<8x128xf32>
    %169 = arith.mulf %168, %167 : vector<8x128xf32>
    %170 = arith.addf %156, %169 : vector<8x128xf32>
    %c12_i32 = arith.constant 12 : i32
    %171 = arith.index_cast %c12_i32 : i32 to index
    %172 = memref.load %arg1[%171] : memref<32xf32, #tpu.memory_space<smem>>
    %173 = vector.broadcast %172 : f32 to vector<8x128xf32>
    %174 = arith.mulf %173, %0 : vector<8x128xf32>
    %175 = arith.index_cast %c12_i32 : i32 to index
    %176 = memref.load %arg2[%175] : memref<32xf32, #tpu.memory_space<smem>>
    %177 = vector.broadcast %176 : f32 to vector<8x128xf32>
    %178 = arith.addf %174, %177 : vector<8x128xf32>
    %179 = arith.index_cast %c12_i32 : i32 to index
    %180 = memref.load %arg3[%179] : memref<32xf32, #tpu.memory_space<smem>>
    %181 = math.tanh %178 : vector<8x128xf32>
    %182 = vector.broadcast %180 : f32 to vector<8x128xf32>
    %183 = arith.mulf %182, %181 : vector<8x128xf32>
    %184 = arith.addf %170, %183 : vector<8x128xf32>
    %c13_i32 = arith.constant 13 : i32
    %185 = arith.index_cast %c13_i32 : i32 to index
    %186 = memref.load %arg1[%185] : memref<32xf32, #tpu.memory_space<smem>>
    %187 = vector.broadcast %186 : f32 to vector<8x128xf32>
    %188 = arith.mulf %187, %0 : vector<8x128xf32>
    %189 = arith.index_cast %c13_i32 : i32 to index
    %190 = memref.load %arg2[%189] : memref<32xf32, #tpu.memory_space<smem>>
    %191 = vector.broadcast %190 : f32 to vector<8x128xf32>
    %192 = arith.addf %188, %191 : vector<8x128xf32>
    %193 = arith.index_cast %c13_i32 : i32 to index
    %194 = memref.load %arg3[%193] : memref<32xf32, #tpu.memory_space<smem>>
    %195 = math.tanh %192 : vector<8x128xf32>
    %196 = vector.broadcast %194 : f32 to vector<8x128xf32>
    %197 = arith.mulf %196, %195 : vector<8x128xf32>
    %198 = arith.addf %184, %197 : vector<8x128xf32>
    %c14_i32 = arith.constant 14 : i32
    %199 = arith.index_cast %c14_i32 : i32 to index
    %200 = memref.load %arg1[%199] : memref<32xf32, #tpu.memory_space<smem>>
    %201 = vector.broadcast %200 : f32 to vector<8x128xf32>
    %202 = arith.mulf %201, %0 : vector<8x128xf32>
    %203 = arith.index_cast %c14_i32 : i32 to index
    %204 = memref.load %arg2[%203] : memref<32xf32, #tpu.memory_space<smem>>
    %205 = vector.broadcast %204 : f32 to vector<8x128xf32>
    %206 = arith.addf %202, %205 : vector<8x128xf32>
    %207 = arith.index_cast %c14_i32 : i32 to index
    %208 = memref.load %arg3[%207] : memref<32xf32, #tpu.memory_space<smem>>
    %209 = math.tanh %206 : vector<8x128xf32>
    %210 = vector.broadcast %208 : f32 to vector<8x128xf32>
    %211 = arith.mulf %210, %209 : vector<8x128xf32>
    %212 = arith.addf %198, %211 : vector<8x128xf32>
    %c15_i32 = arith.constant 15 : i32
    %213 = arith.index_cast %c15_i32 : i32 to index
    %214 = memref.load %arg1[%213] : memref<32xf32, #tpu.memory_space<smem>>
    %215 = vector.broadcast %214 : f32 to vector<8x128xf32>
    %216 = arith.mulf %215, %0 : vector<8x128xf32>
    %217 = arith.index_cast %c15_i32 : i32 to index
    %218 = memref.load %arg2[%217] : memref<32xf32, #tpu.memory_space<smem>>
    %219 = vector.broadcast %218 : f32 to vector<8x128xf32>
    %220 = arith.addf %216, %219 : vector<8x128xf32>
    %221 = arith.index_cast %c15_i32 : i32 to index
    %222 = memref.load %arg3[%221] : memref<32xf32, #tpu.memory_space<smem>>
    %223 = math.tanh %220 : vector<8x128xf32>
    %224 = vector.broadcast %222 : f32 to vector<8x128xf32>
    %225 = arith.mulf %224, %223 : vector<8x128xf32>
    %226 = arith.addf %212, %225 : vector<8x128xf32>
    %c16_i32 = arith.constant 16 : i32
    %227 = arith.index_cast %c16_i32 : i32 to index
    %228 = memref.load %arg1[%227] : memref<32xf32, #tpu.memory_space<smem>>
    %229 = vector.broadcast %228 : f32 to vector<8x128xf32>
    %230 = arith.mulf %229, %0 : vector<8x128xf32>
    %231 = arith.index_cast %c16_i32 : i32 to index
    %232 = memref.load %arg2[%231] : memref<32xf32, #tpu.memory_space<smem>>
    %233 = vector.broadcast %232 : f32 to vector<8x128xf32>
    %234 = arith.addf %230, %233 : vector<8x128xf32>
    %235 = arith.index_cast %c16_i32 : i32 to index
    %236 = memref.load %arg3[%235] : memref<32xf32, #tpu.memory_space<smem>>
    %237 = math.tanh %234 : vector<8x128xf32>
    %238 = vector.broadcast %236 : f32 to vector<8x128xf32>
    %239 = arith.mulf %238, %237 : vector<8x128xf32>
    %240 = arith.addf %226, %239 : vector<8x128xf32>
    %c17_i32 = arith.constant 17 : i32
    %241 = arith.index_cast %c17_i32 : i32 to index
    %242 = memref.load %arg1[%241] : memref<32xf32, #tpu.memory_space<smem>>
    %243 = vector.broadcast %242 : f32 to vector<8x128xf32>
    %244 = arith.mulf %243, %0 : vector<8x128xf32>
    %245 = arith.index_cast %c17_i32 : i32 to index
    %246 = memref.load %arg2[%245] : memref<32xf32, #tpu.memory_space<smem>>
    %247 = vector.broadcast %246 : f32 to vector<8x128xf32>
    %248 = arith.addf %244, %247 : vector<8x128xf32>
    %249 = arith.index_cast %c17_i32 : i32 to index
    %250 = memref.load %arg3[%249] : memref<32xf32, #tpu.memory_space<smem>>
    %251 = math.tanh %248 : vector<8x128xf32>
    %252 = vector.broadcast %250 : f32 to vector<8x128xf32>
    %253 = arith.mulf %252, %251 : vector<8x128xf32>
    %254 = arith.addf %240, %253 : vector<8x128xf32>
    %c18_i32 = arith.constant 18 : i32
    %255 = arith.index_cast %c18_i32 : i32 to index
    %256 = memref.load %arg1[%255] : memref<32xf32, #tpu.memory_space<smem>>
    %257 = vector.broadcast %256 : f32 to vector<8x128xf32>
    %258 = arith.mulf %257, %0 : vector<8x128xf32>
    %259 = arith.index_cast %c18_i32 : i32 to index
    %260 = memref.load %arg2[%259] : memref<32xf32, #tpu.memory_space<smem>>
    %261 = vector.broadcast %260 : f32 to vector<8x128xf32>
    %262 = arith.addf %258, %261 : vector<8x128xf32>
    %263 = arith.index_cast %c18_i32 : i32 to index
    %264 = memref.load %arg3[%263] : memref<32xf32, #tpu.memory_space<smem>>
    %265 = math.tanh %262 : vector<8x128xf32>
    %266 = vector.broadcast %264 : f32 to vector<8x128xf32>
    %267 = arith.mulf %266, %265 : vector<8x128xf32>
    %268 = arith.addf %254, %267 : vector<8x128xf32>
    %c19_i32 = arith.constant 19 : i32
    %269 = arith.index_cast %c19_i32 : i32 to index
    %270 = memref.load %arg1[%269] : memref<32xf32, #tpu.memory_space<smem>>
    %271 = vector.broadcast %270 : f32 to vector<8x128xf32>
    %272 = arith.mulf %271, %0 : vector<8x128xf32>
    %273 = arith.index_cast %c19_i32 : i32 to index
    %274 = memref.load %arg2[%273] : memref<32xf32, #tpu.memory_space<smem>>
    %275 = vector.broadcast %274 : f32 to vector<8x128xf32>
    %276 = arith.addf %272, %275 : vector<8x128xf32>
    %277 = arith.index_cast %c19_i32 : i32 to index
    %278 = memref.load %arg3[%277] : memref<32xf32, #tpu.memory_space<smem>>
    %279 = math.tanh %276 : vector<8x128xf32>
    %280 = vector.broadcast %278 : f32 to vector<8x128xf32>
    %281 = arith.mulf %280, %279 : vector<8x128xf32>
    %282 = arith.addf %268, %281 : vector<8x128xf32>
    %c20_i32 = arith.constant 20 : i32
    %283 = arith.index_cast %c20_i32 : i32 to index
    %284 = memref.load %arg1[%283] : memref<32xf32, #tpu.memory_space<smem>>
    %285 = vector.broadcast %284 : f32 to vector<8x128xf32>
    %286 = arith.mulf %285, %0 : vector<8x128xf32>
    %287 = arith.index_cast %c20_i32 : i32 to index
    %288 = memref.load %arg2[%287] : memref<32xf32, #tpu.memory_space<smem>>
    %289 = vector.broadcast %288 : f32 to vector<8x128xf32>
    %290 = arith.addf %286, %289 : vector<8x128xf32>
    %291 = arith.index_cast %c20_i32 : i32 to index
    %292 = memref.load %arg3[%291] : memref<32xf32, #tpu.memory_space<smem>>
    %293 = math.tanh %290 : vector<8x128xf32>
    %294 = vector.broadcast %292 : f32 to vector<8x128xf32>
    %295 = arith.mulf %294, %293 : vector<8x128xf32>
    %296 = arith.addf %282, %295 : vector<8x128xf32>
    %c21_i32 = arith.constant 21 : i32
    %297 = arith.index_cast %c21_i32 : i32 to index
    %298 = memref.load %arg1[%297] : memref<32xf32, #tpu.memory_space<smem>>
    %299 = vector.broadcast %298 : f32 to vector<8x128xf32>
    %300 = arith.mulf %299, %0 : vector<8x128xf32>
    %301 = arith.index_cast %c21_i32 : i32 to index
    %302 = memref.load %arg2[%301] : memref<32xf32, #tpu.memory_space<smem>>
    %303 = vector.broadcast %302 : f32 to vector<8x128xf32>
    %304 = arith.addf %300, %303 : vector<8x128xf32>
    %305 = arith.index_cast %c21_i32 : i32 to index
    %306 = memref.load %arg3[%305] : memref<32xf32, #tpu.memory_space<smem>>
    %307 = math.tanh %304 : vector<8x128xf32>
    %308 = vector.broadcast %306 : f32 to vector<8x128xf32>
    %309 = arith.mulf %308, %307 : vector<8x128xf32>
    %310 = arith.addf %296, %309 : vector<8x128xf32>
    %c22_i32 = arith.constant 22 : i32
    %311 = arith.index_cast %c22_i32 : i32 to index
    %312 = memref.load %arg1[%311] : memref<32xf32, #tpu.memory_space<smem>>
    %313 = vector.broadcast %312 : f32 to vector<8x128xf32>
    %314 = arith.mulf %313, %0 : vector<8x128xf32>
    %315 = arith.index_cast %c22_i32 : i32 to index
    %316 = memref.load %arg2[%315] : memref<32xf32, #tpu.memory_space<smem>>
    %317 = vector.broadcast %316 : f32 to vector<8x128xf32>
    %318 = arith.addf %314, %317 : vector<8x128xf32>
    %319 = arith.index_cast %c22_i32 : i32 to index
    %320 = memref.load %arg3[%319] : memref<32xf32, #tpu.memory_space<smem>>
    %321 = math.tanh %318 : vector<8x128xf32>
    %322 = vector.broadcast %320 : f32 to vector<8x128xf32>
    %323 = arith.mulf %322, %321 : vector<8x128xf32>
    %324 = arith.addf %310, %323 : vector<8x128xf32>
    %c23_i32 = arith.constant 23 : i32
    %325 = arith.index_cast %c23_i32 : i32 to index
    %326 = memref.load %arg1[%325] : memref<32xf32, #tpu.memory_space<smem>>
    %327 = vector.broadcast %326 : f32 to vector<8x128xf32>
    %328 = arith.mulf %327, %0 : vector<8x128xf32>
    %329 = arith.index_cast %c23_i32 : i32 to index
    %330 = memref.load %arg2[%329] : memref<32xf32, #tpu.memory_space<smem>>
    %331 = vector.broadcast %330 : f32 to vector<8x128xf32>
    %332 = arith.addf %328, %331 : vector<8x128xf32>
    %333 = arith.index_cast %c23_i32 : i32 to index
    %334 = memref.load %arg3[%333] : memref<32xf32, #tpu.memory_space<smem>>
    %335 = math.tanh %332 : vector<8x128xf32>
    %336 = vector.broadcast %334 : f32 to vector<8x128xf32>
    %337 = arith.mulf %336, %335 : vector<8x128xf32>
    %338 = arith.addf %324, %337 : vector<8x128xf32>
    %c24_i32 = arith.constant 24 : i32
    %339 = arith.index_cast %c24_i32 : i32 to index
    %340 = memref.load %arg1[%339] : memref<32xf32, #tpu.memory_space<smem>>
    %341 = vector.broadcast %340 : f32 to vector<8x128xf32>
    %342 = arith.mulf %341, %0 : vector<8x128xf32>
    %343 = arith.index_cast %c24_i32 : i32 to index
    %344 = memref.load %arg2[%343] : memref<32xf32, #tpu.memory_space<smem>>
    %345 = vector.broadcast %344 : f32 to vector<8x128xf32>
    %346 = arith.addf %342, %345 : vector<8x128xf32>
    %347 = arith.index_cast %c24_i32 : i32 to index
    %348 = memref.load %arg3[%347] : memref<32xf32, #tpu.memory_space<smem>>
    %349 = math.tanh %346 : vector<8x128xf32>
    %350 = vector.broadcast %348 : f32 to vector<8x128xf32>
    %351 = arith.mulf %350, %349 : vector<8x128xf32>
    %352 = arith.addf %338, %351 : vector<8x128xf32>
    %c25_i32 = arith.constant 25 : i32
    %353 = arith.index_cast %c25_i32 : i32 to index
    %354 = memref.load %arg1[%353] : memref<32xf32, #tpu.memory_space<smem>>
    %355 = vector.broadcast %354 : f32 to vector<8x128xf32>
    %356 = arith.mulf %355, %0 : vector<8x128xf32>
    %357 = arith.index_cast %c25_i32 : i32 to index
    %358 = memref.load %arg2[%357] : memref<32xf32, #tpu.memory_space<smem>>
    %359 = vector.broadcast %358 : f32 to vector<8x128xf32>
    %360 = arith.addf %356, %359 : vector<8x128xf32>
    %361 = arith.index_cast %c25_i32 : i32 to index
    %362 = memref.load %arg3[%361] : memref<32xf32, #tpu.memory_space<smem>>
    %363 = math.tanh %360 : vector<8x128xf32>
    %364 = vector.broadcast %362 : f32 to vector<8x128xf32>
    %365 = arith.mulf %364, %363 : vector<8x128xf32>
    %366 = arith.addf %352, %365 : vector<8x128xf32>
    %c26_i32 = arith.constant 26 : i32
    %367 = arith.index_cast %c26_i32 : i32 to index
    %368 = memref.load %arg1[%367] : memref<32xf32, #tpu.memory_space<smem>>
    %369 = vector.broadcast %368 : f32 to vector<8x128xf32>
    %370 = arith.mulf %369, %0 : vector<8x128xf32>
    %371 = arith.index_cast %c26_i32 : i32 to index
    %372 = memref.load %arg2[%371] : memref<32xf32, #tpu.memory_space<smem>>
    %373 = vector.broadcast %372 : f32 to vector<8x128xf32>
    %374 = arith.addf %370, %373 : vector<8x128xf32>
    %375 = arith.index_cast %c26_i32 : i32 to index
    %376 = memref.load %arg3[%375] : memref<32xf32, #tpu.memory_space<smem>>
    %377 = math.tanh %374 : vector<8x128xf32>
    %378 = vector.broadcast %376 : f32 to vector<8x128xf32>
    %379 = arith.mulf %378, %377 : vector<8x128xf32>
    %380 = arith.addf %366, %379 : vector<8x128xf32>
    %c27_i32 = arith.constant 27 : i32
    %381 = arith.index_cast %c27_i32 : i32 to index
    %382 = memref.load %arg1[%381] : memref<32xf32, #tpu.memory_space<smem>>
    %383 = vector.broadcast %382 : f32 to vector<8x128xf32>
    %384 = arith.mulf %383, %0 : vector<8x128xf32>
    %385 = arith.index_cast %c27_i32 : i32 to index
    %386 = memref.load %arg2[%385] : memref<32xf32, #tpu.memory_space<smem>>
    %387 = vector.broadcast %386 : f32 to vector<8x128xf32>
    %388 = arith.addf %384, %387 : vector<8x128xf32>
    %389 = arith.index_cast %c27_i32 : i32 to index
    %390 = memref.load %arg3[%389] : memref<32xf32, #tpu.memory_space<smem>>
    %391 = math.tanh %388 : vector<8x128xf32>
    %392 = vector.broadcast %390 : f32 to vector<8x128xf32>
    %393 = arith.mulf %392, %391 : vector<8x128xf32>
    %394 = arith.addf %380, %393 : vector<8x128xf32>
    %c28_i32 = arith.constant 28 : i32
    %395 = arith.index_cast %c28_i32 : i32 to index
    %396 = memref.load %arg1[%395] : memref<32xf32, #tpu.memory_space<smem>>
    %397 = vector.broadcast %396 : f32 to vector<8x128xf32>
    %398 = arith.mulf %397, %0 : vector<8x128xf32>
    %399 = arith.index_cast %c28_i32 : i32 to index
    %400 = memref.load %arg2[%399] : memref<32xf32, #tpu.memory_space<smem>>
    %401 = vector.broadcast %400 : f32 to vector<8x128xf32>
    %402 = arith.addf %398, %401 : vector<8x128xf32>
    %403 = arith.index_cast %c28_i32 : i32 to index
    %404 = memref.load %arg3[%403] : memref<32xf32, #tpu.memory_space<smem>>
    %405 = math.tanh %402 : vector<8x128xf32>
    %406 = vector.broadcast %404 : f32 to vector<8x128xf32>
    %407 = arith.mulf %406, %405 : vector<8x128xf32>
    %408 = arith.addf %394, %407 : vector<8x128xf32>
    %c29_i32 = arith.constant 29 : i32
    %409 = arith.index_cast %c29_i32 : i32 to index
    %410 = memref.load %arg1[%409] : memref<32xf32, #tpu.memory_space<smem>>
    %411 = vector.broadcast %410 : f32 to vector<8x128xf32>
    %412 = arith.mulf %411, %0 : vector<8x128xf32>
    %413 = arith.index_cast %c29_i32 : i32 to index
    %414 = memref.load %arg2[%413] : memref<32xf32, #tpu.memory_space<smem>>
    %415 = vector.broadcast %414 : f32 to vector<8x128xf32>
    %416 = arith.addf %412, %415 : vector<8x128xf32>
    %417 = arith.index_cast %c29_i32 : i32 to index
    %418 = memref.load %arg3[%417] : memref<32xf32, #tpu.memory_space<smem>>
    %419 = math.tanh %416 : vector<8x128xf32>
    %420 = vector.broadcast %418 : f32 to vector<8x128xf32>
    %421 = arith.mulf %420, %419 : vector<8x128xf32>
    %422 = arith.addf %408, %421 : vector<8x128xf32>
    %c30_i32 = arith.constant 30 : i32
    %423 = arith.index_cast %c30_i32 : i32 to index
    %424 = memref.load %arg1[%423] : memref<32xf32, #tpu.memory_space<smem>>
    %425 = vector.broadcast %424 : f32 to vector<8x128xf32>
    %426 = arith.mulf %425, %0 : vector<8x128xf32>
    %427 = arith.index_cast %c30_i32 : i32 to index
    %428 = memref.load %arg2[%427] : memref<32xf32, #tpu.memory_space<smem>>
    %429 = vector.broadcast %428 : f32 to vector<8x128xf32>
    %430 = arith.addf %426, %429 : vector<8x128xf32>
    %431 = arith.index_cast %c30_i32 : i32 to index
    %432 = memref.load %arg3[%431] : memref<32xf32, #tpu.memory_space<smem>>
    %433 = math.tanh %430 : vector<8x128xf32>
    %434 = vector.broadcast %432 : f32 to vector<8x128xf32>
    %435 = arith.mulf %434, %433 : vector<8x128xf32>
    %436 = arith.addf %422, %435 : vector<8x128xf32>
    %c31_i32 = arith.constant 31 : i32
    %437 = arith.index_cast %c31_i32 : i32 to index
    %438 = memref.load %arg1[%437] : memref<32xf32, #tpu.memory_space<smem>>
    %439 = vector.broadcast %438 : f32 to vector<8x128xf32>
    %440 = arith.mulf %439, %0 : vector<8x128xf32>
    %441 = arith.index_cast %c31_i32 : i32 to index
    %442 = memref.load %arg2[%441] : memref<32xf32, #tpu.memory_space<smem>>
    %443 = vector.broadcast %442 : f32 to vector<8x128xf32>
    %444 = arith.addf %440, %443 : vector<8x128xf32>
    %445 = arith.index_cast %c31_i32 : i32 to index
    %446 = memref.load %arg3[%445] : memref<32xf32, #tpu.memory_space<smem>>
    %447 = math.tanh %444 : vector<8x128xf32>
    %448 = vector.broadcast %446 : f32 to vector<8x128xf32>
    %449 = arith.mulf %448, %447 : vector<8x128xf32>
    %450 = arith.addf %436, %449 : vector<8x128xf32>
    %c32_i32 = arith.constant 32 : i32
    %c0_2 = arith.constant 0 : index
    %c0_3 = arith.constant 0 : index
    %451 = vector.load %arg6[%c0_2, %c0_3] : memref<8x128xf32, #tpu.memory_space<vmem>>, vector<8x128xf32>
    tpu.vector_store %arg6[%c0_2, %c0_3], %450 {strides = array<i32>} : memref<8x128xf32, #tpu.memory_space<vmem>>, vector<8x128xf32>,
    return
  }
  func.func @transform_0(%arg0: i32) -> i32 {
    %c0_i32 = arith.constant 0 : i32
    %c0_i32_0 = arith.constant 0 : i32
    return %c0_i32 : i32
  }
  func.func @transform_1(%arg0: i32) -> i32 {
    %c0_i32 = arith.constant 0 : i32
    %c0_i32_0 = arith.constant 0 : i32
    return %c0_i32 : i32
  }
  func.func @transform_2(%arg0: i32) -> i32 {
    %c0_i32 = arith.constant 0 : i32
    %c0_i32_0 = arith.constant 0 : i32
    return %c0_i32 : i32
  }
  func.func @transform_3(%arg0: i32) -> i32 {
    %c0_i32 = arith.constant 0 : i32
    %c0_i32_0 = arith.constant 0 : i32
    return %c0_i32 : i32
  }
  func.func @transform_4(%arg0: i32) -> (i32, i32) {
    %c0_i32 = arith.constant 0 : i32
    %c0_i32_0 = arith.constant 0 : i32
    return %arg0, %c0_i32 : i32, i32
  }
  func.func @transform_5(%arg0: i32) -> (i32, i32) {
    %c0_i32 = arith.constant 0 : i32
    %c0_i32_0 = arith.constant 0 : i32
    return %arg0, %c0_i32 : i32, i32
  }
}

</mosaic_0001>

<bundles_post_ra>
// kernel: tpu_custom_call.1
= control target key start
LH: loop header
LB: loop body
LE: loop exit
PB: predicated region body
PF: predicated region fallthrough
CT: control target
= control target key end

     0   :  { %11 = vsyncpa [#allocation5], 0  ;;  %s1011_s0 = inlined_call_operand.vmem [shape: f32[32], index: 0, kind: input, shape index: {}]   ;;  %s1012_s1 = inlined_call_operand.vmem [shape: f32[32], index: 1, kind: input, shape index: {}]   ;;  %s1013_s2 = inlined_call_operand.vmem [shape: f32[32], index: 2, kind: input, shape index: {}]   ;;  %s1014_s3 = inlined_call_operand.<no memory space> [shape: f32[1], index: 3, kind: input, shape index: {}]   ;;  %s1015_s4 = inlined_call_operand.vmem [shape: f32[8,128], index: 4, kind: input, shape index: {}]   ;;  %s1016_s5 = inlined_call_operand.hbm [shape: f32[8,128], index: 5, kind: output, shape index: {}]  }
   0x1   :  { %12 = vsyncpa [#allocation7], 0  ;;  %s30_s20 = sshll.u32 %s1012_s1, 4  ;;  %s31_s20 = int_to_ptr.vmem [resolvable:$true] %s30_s20 }
   0x2   :  { %13 = vsyncpa [#allocation4], 0  ;;  %s20_s23 = sshll.u32 %s1011_s0, 4  ;;  %s591_s24 = scalar_lea.vmem %s31_s20, 16  ;;  %s21_s23 = int_to_ptr.vmem [resolvable:$true] %s20_s23 }
   0x3   :  { %p592_p0 = scmp.ne.s32.totalorder %s31_s20, %s591_s24  ;;  %p596_p1 = scmp.lt.s32.totalorder %s31_s20, %s31_s20 }
   0x4   :  { %p597_p2 = scmp.lt.s32.totalorder %s591_s24, %s591_s24 }
   0x6   :  { %p598_p3 = por %p597_p2, %p596_p1 }
   0x8   :  { %p599_p4 = pnand %p598_p3, %p592_p0 }
   0xa   :  { %602 = shalt.err (!%p599_p4)
}
   0xb   :  { %s655_s25 = smov [#allocation6]   ;;  %s603_s26 = scalar_lea.vmem %s21_s23, 16 }
   0xc   :  { %33 = dma.vmem_to_smem %s31_s20, 16, %s655_s25, [#allocation7]  }
   0xd   :  { %p604_p5 = scmp.ne.s32.totalorder %s21_s23, %s603_s26  ;;  %p608_p6 = scmp.lt.s32.totalorder %s21_s23, %s21_s23 }
   0xe   :  { %p609_p7 = scmp.lt.s32.totalorder %s603_s26, %s603_s26 }
  0x10   :  { %p610_p8 = por %p609_p7, %p608_p6 }
  0x12   :  { %p611_p9 = pnand %p610_p8, %p604_p5 }
  0x14   :  { %614 = shalt.err (!%p611_p9)
}
  0x15   :  { %s656_s1 = smov [#allocation3]   ;;  %s40_s28 = sshll.u32 %s1013_s2, 4  ;;  %s41_s28 = int_to_ptr.vmem [resolvable:$true] %s40_s28 }
  0x16   :  { %23 = dma.vmem_to_smem %s21_s23, 16, %s656_s1, [#allocation5]  }
  0x17   :  { %s615_s29 = scalar_lea.vmem %s41_s28, 16  ;;  %p620_p11 = scmp.lt.s32.totalorder %s41_s28, %s41_s28 }
  0x18   :  { %p616_p10 = scmp.ne.s32.totalorder %s41_s28, %s615_s29  ;;  %p621_p12 = scmp.lt.s32.totalorder %s615_s29, %s615_s29 }
  0x1a   :  { %p622_p13 = por %p621_p12, %p620_p11 }
  0x1c   :  { %p623_p0 = pnand %p622_p13, %p616_p10 }
  0x1e   :  { %626 = shalt.err (!%p623_p0)
}
  0x1f   :  { %s657_s30 = smov [#allocation8]  }
  0x20   :  { %43 = dma.vmem_to_smem %s41_s28, 16, %s657_s30, [#allocation7]  }
  0x21   :  { %649 = dma.done.wait [#allocation5], 16  }
  0x22   :  { %650 = vsyncadd [#allocation5], 4294967280 }
  0x23   :  { %651 = dma.done.wait [#allocation7], 32  }
  0x24   :  { %652 = vsyncadd [#allocation7], 4294967264 }
  0x25   :  { %57 = sfence }
  0x26   :  { %s61_s6 = sld [smem:[#allocation3]]  ;;  %s430_s8 = sld [smem:[#allocation3 + $0x1]]  ;;  %v703_v0 = vld [vmem:[%s1015_s4] sm:$0xff]  ;;  %v60_v26 = vstv %s1014_s3 }
  0x27   :  { %s64_s7 = sld [smem:[#allocation6]]  ;;  %s431_s9 = sld [smem:[#allocation6 + $0x1]] }
  0x28   :  { %s433_s2 = sld [smem:[#allocation3 + $0x2]]  ;;  %s436_s13 = sld [smem:[#allocation3 + $0x3]] }
  0x29   :  { %s698_s10 = sld [smem:[#allocation6 + $0x2]]  ;;  %s705_s14 = sld [smem:[#allocation6 + $0x3]] }
  0x2a   :  { %s707_s15 = sld [smem:[#allocation3 + $0x4]]  ;;  %s712_s17 = sld [smem:[#allocation3 + $0x5]] }
  0x2b   :  { %s709_s16 = sld [smem:[#allocation6 + $0x4]]  ;;  %s714_s18 = sld [smem:[#allocation8]] }
  0x2c   :  { %v62_v1 = vstv %s61_s6  ;;  %v73_v4 = vstv %s430_s8  ;;  %s717_s4 = sld [smem:[#allocation6 + $0x5]]  ;;  %s720_s19 = sld [smem:[#allocation3 + $0x6]] }
  0x2d   :  { %v65_v2 = vstv %s64_s7  ;;  %v63_v3 = vmul.f32 %v62_v1, %v703_v0  ;;  %v74_v5 = vmul.f32 %v73_v4, %v703_v0  ;;  %v76_v6 = vstv %s431_s9  ;;  %s722_s20 = sld [smem:[#allocation6 + $0x6]]  ;;  %s724_s21 = sld [smem:[#allocation8 + $0x1]] }
  0x2e   :  { %v84_v8 = vstv %s433_s2  ;;  %v95_v12 = vstv %s436_s13  ;;  %s727_s22 = sld [smem:[#allocation3 + $0x7]]  ;;  %s729_s23 = sld [smem:[#allocation8 + $0x2]] }
  0x2f   :  { %v66_v7 = vadd.f32 %v65_v2, %v63_v3  ;;  %v87_v9 = vstv %s698_s10  ;;  %v77_v10 = vadd.f32 %v76_v6, %v74_v5  ;;  %v85_v11 = vmul.f32 %v84_v8, %v703_v0  ;;  %s733_s24 = sld [smem:[#allocation6 + $0x7]]  ;;  %s737_s25 = sld [smem:[#allocation3 + $0x8]] }
  0x30   :  { %v96_v13 = vmul.f32 %v95_v12, %v703_v0  ;;  %v98_v14 = vstv %s705_s14  ;;  %v106_v16 = vstv %s707_s15  ;;  %s739_s26 = sld [smem:[#allocation6 + $0x8]]  ;;  %v117_v20 = vstv %s712_s17  ;;  %s743_s1 = sld [smem:[#allocation3 + $0x9]] }
  0x31   :  { %527 = vtanh.f32 %v66_v7  ;;  %v88_v15 = vadd.f32 %v87_v9, %v85_v11  ;;  %v109_v17 = vstv %s709_s16  ;;  %v107_v19 = vmul.f32 %v106_v16, %v703_v0  ;;  %s745_s0 = sld [smem:[#allocation8 + $0x3]]  ;;  %s749_s27 = sld [smem:[#allocation6 + $0x9]] }
  0x32   :  { %529 = vtanh.f32 %v77_v10  ;;  %v99_v18 = vadd.f32 %v98_v14, %v96_v13  ;;  %v118_v21 = vmul.f32 %v117_v20, %v703_v0  ;;  %v120_v22 = vstv %s717_s4  ;;  %s753_s28 = sld [smem:[#allocation3 + $0xa]]  ;;  %s760_s7 = sld [smem:[#allocation8 + $0x4]] }
  0x33   :  { %531 = vtanh.f32 %v88_v15  ;;  %v110_v23 = vadd.f32 %v109_v17, %v107_v19  ;;  %v128_v24 = vstv %s720_s19  ;;  %v131_v25 = vstv %s722_s20  ;;  %s755_s29 = sld [smem:[#allocation6 + $0xa]]  ;;  %s764_s8 = sld [smem:[#allocation3 + $0xb]] }
  0x34   :  { %533 = vtanh.f32 %v99_v18  ;;  %v121_v27 = vadd.f32 %v120_v22, %v118_v21  ;;  %v129_v28 = vmul.f32 %v128_v24, %v703_v0  ;;  %v139_v29 = vstv %s727_s22  ;;  %s767_s9 = sld [smem:[#allocation8 + $0x5]]  ;;  %s771_s2 = sld [smem:[#allocation6 + $0xb]] }
  0x35   :  { %v69_v30 = vstv %s714_s18  ;;  %535 = vtanh.f32 %v110_v23  ;;  %v140_v31 = vmul.f32 %v139_v29, %v703_v0  ;;  %v142_v32 = vstv %s733_s24  ;;  %s775_s3 = sld [smem:[#allocation3 + $0xc]]  ;;  %s782_s11 = sld [smem:[#allocation3 + $0xd]] }
  0x36   :  { %537 = vtanh.f32 %v121_v27  ;;  %v132_v33 = vadd.f32 %v131_v25, %v129_v28  ;;  %v150_v34 = vstv %s737_s25  ;;  %v153_v35 = vstv %s739_s26  ;;  %s777_s10 = sld [smem:[#allocation6 + $0xc]]  ;;  %s785_s12 = sld [smem:[#allocation8 + $0x6]] }
  0x37   :  { %v80_v36 = vstv %s724_s21  ;;  %v143_v37 = vadd.f32 %v142_v32, %v140_v31  ;;  %v151_v38 = vmul.f32 %v150_v34, %v703_v0  ;;  %v161_v39 = vstv %s743_s1  ;;  %s789_s13 = sld [smem:[#allocation6 + $0xd]]  ;;  %s793_s14 = sld [smem:[#allocation3 + $0xe]] }
  0x38   :  { %v91_v40 = vstv %s729_s23  ;;  %539 = vtanh.f32 %v132_v33  ;;  %v162_v41 = vmul.f32 %v161_v39, %v703_v0  ;;  %v164_v42 = vstv %s749_s27  ;;  %s797_s15 = sld [smem:[#allocation6 + $0xe]]  ;;  %s799_s16 = sld [smem:[#allocation8 + $0x7]] }
  0x39   :  { %541 = vtanh.f32 %v143_v37  ;;  %v154_v44 = vadd.f32 %v153_v35, %v151_v38  ;;  %v172_v45 = vstv %s753_s28  ;;  %v175_v46 = vstv %s755_s29  ;;  %s803_s17 = sld [smem:[#allocation3 + $0xf]]  ;;  %s806_s18 = sld [smem:[#allocation8 + $0x8]] }
  0x3a   :  { %v102_v49 = vstv %s745_s0  ;;  %v165_v50 = vadd.f32 %v164_v42, %v162_v41  ;;  %v173_v51 = vmul.f32 %v172_v45, %v703_v0  ;;  %v183_v53 = vstv %s764_s8  ;;  %s811_s4 = sld [smem:[#allocation6 + $0xf]]  ;;  %s813_s19 = sld [smem:[#allocation3 + $0x10]] }
  0x3b   :  { %v528_v43 = vpop.eup %527  ;;  %543 = vtanh.f32 %v154_v44  ;;  %v186_v54 = vstv %s771_s2  ;;  %v113_v57 = vstv %s760_s7  ;;  %v184_v59 = vmul.f32 %v183_v53, %v703_v0  ;;  %s815_s20 = sld [smem:[#allocation8 + $0x9]]  ;;  %s821_s21 = sld [smem:[#allocation6 + $0x10]] }
  0x3c   :  { %v530_v47 = vpop.eup %529  ;;  %v70_v48 = vmul.f32 %v528_v43, %v69_v30  ;;  %v176_v58 = vadd.f32 %v175_v46, %v173_v51  ;;  %v124_v62 = vstv %s767_s9  ;;  %545 = vtanh.f32 %v165_v50  ;;  %s825_s22 = sld [smem:[#allocation3 + $0x11]]  ;;  %s829_s24 = sld [smem:[#allocation8 + $0xa]] }
  0x3d   :  { %v81_v52 = vmul.f32 %v530_v47, %v80_v36  ;;  %v532_v55 = vpop.eup %531  ;;  %v194_v63 = vstv %s775_s3  ;;  %v187_v3 = vadd.f32 %v186_v54, %v184_v59  ;;  %v197_v4 = vstv %s777_s10  ;;  %s827_s23 = sld [smem:[#allocation6 + $0x11]]  ;;  %s831_s25 = sld [smem:[#allocation8 + $0xb]] }
  0x3e   :  { %v71_v56 = vadd.f32 %v70_v48, %v60_v26  ;;  %v534_v60 = vpop.eup %533  ;;  %v92_v61 = vmul.f32 %v532_v55, %v91_v40  ;;  %547 = vtanh.f32 %v176_v58  ;;  %v195_v6 = vmul.f32 %v194_v63, %v703_v0  ;;  %s836_s26 = sld [smem:[#allocation3 + $0x12]]  ;;  %s841_s0 = sld [smem:[#allocation8 + $0xc]] }
  0x3f   :  { %v103_v2 = vmul.f32 %v534_v60, %v102_v49  ;;  %v536_v5 = vpop.eup %535  ;;  %v205_v7 = vstv %s782_s11  ;;  %v208_v8 = vstv %s789_s13  ;;  %v135_v12 = vstv %s785_s12  ;;  %s838_s1 = sld [smem:[#allocation6 + $0x12]]  ;;  %s845_s27 = sld [smem:[#allocation3 + $0x13]] }
  0x40   :  { %v82_v1 = vadd.f32 %v81_v52, %v71_v56  ;;  %v538_v9 = vpop.eup %537  ;;  %v114_v11 = vmul.f32 %v536_v5, %v113_v57  ;;  %v206_v13 = vmul.f32 %v205_v7, %v703_v0  ;;  %549 = vtanh.f32 %v187_v3  ;;  %s847_s28 = sld [smem:[#allocation6 + $0x13]]  ;;  %s852_s29 = sld [smem:[#allocation3 + $0x14]] }
  0x41   :  { %v125_v14 = vmul.f32 %v538_v9, %v124_v62  ;;  %v198_v15 = vadd.f32 %v197_v4, %v195_v6  ;;  %v216_v16 = vstv %s793_s14  ;;  %v219_v21 = vstv %s797_s15  ;;  %s856_s30 = sld [smem:[#allocation6 + $0x14]]  ;;  %s858_s6 = sld [smem:[#allocation8 + $0xd]] }
  0x42   :  { %v93_v10 = vadd.f32 %v92_v61, %v82_v1  ;;  %v540_v17 = vpop.eup %539  ;;  %v209_v19 = vadd.f32 %v208_v8, %v206_v13  ;;  %v217_v20 = vmul.f32 %v216_v16, %v703_v0  ;;  %v146_v23 = vstv %s799_s16  ;;  %s863_s7 = sld [smem:[#allocation3 + $0x15]]  ;;  %s869_s9 = sld [smem:[#allocation8 + $0xe]] }
  0x43   :  { %v542_v22 = vpop.eup %541  ;;  %551 = vtanh.f32 %v198_v15  ;;  %v227_v24 = vstv %s803_s17  ;;  %v136_v26 = vmul.f32 %v540_v17, %v135_v12  ;;  %v157_v27 = vstv %s806_s18  ;;  %s865_s8 = sld [smem:[#allocation6 + $0x15]]  ;;  %s871_s2 = sld [smem:[#allocation8 + $0xf]] }
  0x44   :  { %v104_v18 = vadd.f32 %v103_v2, %v93_v10  ;;  %v220_v28 = vadd.f32 %v219_v21, %v217_v20  ;;  %553 = vtanh.f32 %v209_v19  ;;  %v228_v30 = vmul.f32 %v227_v24, %v703_v0  ;;  %s876_s3 = sld [smem:[#allocation3 + $0x16]]  ;;  %s882_s11 = sld [smem:[#allocation3 + $0x17]] }
  0x45   :  { %v544_v29 = vpop.eup %543  ;;  %v230_v31 = vstv %s811_s4  ;;  %v238_v32 = vstv %s813_s19  ;;  %v147_v34 = vmul.f32 %v542_v22, %v146_v23  ;;  %v168_v35 = vstv %s815_s20  ;;  %s878_s10 = sld [smem:[#allocation6 + $0x16]]  ;;  %s886_s12 = sld [smem:[#allocation6 + $0x17]] }
  0x46   :  { %v115_v25 = vadd.f32 %v114_v11, %v104_v18  ;;  %v239_v36 = vmul.f32 %v238_v32, %v703_v0  ;;  %v546_v37 = vpop.eup %545  ;;  %v158_v38 = vmul.f32 %v544_v29, %v157_v27  ;;  %555 = vtanh.f32 %v220_v28  ;;  %s888_s13 = sld [smem:[#allocation8 + $0x10]]  ;;  %s899_s16 = sld [smem:[#allocation8 + $0x11]] }
  0x47   :  { %v231_v39 = vadd.f32 %v230_v31, %v228_v30  ;;  %v241_v40 = vstv %s821_s21  ;;  %v249_v43 = vstv %s825_s22  ;;  %v252_v44 = vstv %s827_s23  ;;  %s894_s14 = sld [smem:[#allocation3 + $0x18]]  ;;  %s901_s17 = sld [smem:[#allocation3 + $0x19]] }
  0x48   :  { %v126_v33 = vadd.f32 %v125_v14, %v115_v25  ;;  %v242_v42 = vadd.f32 %v241_v40, %v239_v36  ;;  %v548_v45 = vpop.eup %547  ;;  %v179_v46 = vstv %s829_s24  ;;  %v190_v47 = vstv %s831_s25  ;;  %s896_s15 = sld [smem:[#allocation6 + $0x18]]  ;;  %s903_s18 = sld [smem:[#allocation8 + $0x12]] }
  0x49   :  { %557 = vtanh.f32 %v231_v39  ;;  %v250_v48 = vmul.f32 %v249_v43, %v703_v0  ;;  %v169_v50 = vmul.f32 %v546_v37, %v168_v35  ;;  %v260_v51 = vstv %s836_s26  ;;  %s910_s4 = sld [smem:[#allocation6 + $0x19]]  ;;  %s912_s19 = sld [smem:[#allocation3 + $0x1a]] }
  0x4a   :  { %v137_v41 = vadd.f32 %v136_v26, %v126_v33  ;;  %v263_v52 = vstv %s838_s1  ;;  %v550_v53 = vpop.eup %549  ;;  %v201_v54 = vstv %s841_s0  ;;  %559 = vtanh.f32 %v242_v42  ;;  %s914_s20 = sld [smem:[#allocation8 + $0x13]]  ;;  %s920_s21 = sld [smem:[#allocation6 + $0x1a]] }
  0x4b   :  { %v253_v55 = vadd.f32 %v252_v44, %v250_v48  ;;  %v261_v56 = vmul.f32 %v260_v51, %v703_v0  ;;  %v180_v58 = vmul.f32 %v548_v45, %v179_v46  ;;  %v271_v59 = vstv %s845_s27  ;;  %s922_s22 = sld [smem:[#allocation3 + $0x1b]]  ;;  %s924_s23 = sld [smem:[#allocation8 + $0x14]] }
  0x4c   :  { %v148_v49 = vadd.f32 %v147_v34, %v137_v41  ;;  %v274_v60 = vstv %s847_s28  ;;  %v272_v63 = vmul.f32 %v271_v59, %v703_v0  ;;  %v282_v1 = vstv %s852_s29  ;;  %s929_s24 = sld [smem:[#allocation8 + $0x15]]  ;;  %s931_s25 = sld [smem:[#allocation6 + $0x1b]] }
  0x4d   :  { %v552_v61 = vpop.eup %551  ;;  %561 = vtanh.f32 %v253_v55  ;;  %v264_v62 = vadd.f32 %v263_v52, %v261_v56  ;;  %v191_v3 = vmul.f32 %v550_v53, %v190_v47  ;;  %v283_v4 = vmul.f32 %v282_v1, %v703_v0  ;;  %s935_s26 = sld [smem:[#allocation3 + $0x1c]]  ;;  %s942_s0 = sld [smem:[#allocation3 + $0x1d]] }
  0x4e   :  { %v159_v57 = vadd.f32 %v158_v38, %v148_v49  ;;  %v285_v5 = vstv %s856_s30  ;;  %v554_v6 = vpop.eup %553  ;;  %v202_v7 = vmul.f32 %v552_v61, %v201_v54  ;;  %v212_v8 = vstv %s858_s6  ;;  %s937_s1 = sld [smem:[#allocation6 + $0x1c]]  ;;  %s946_s27 = sld [smem:[#allocation6 + $0x1d]] }
  0x4f   :  { %563 = vtanh.f32 %v264_v62  ;;  %v275_v9 = vadd.f32 %v274_v60, %v272_v63  ;;  %v286_v11 = vadd.f32 %v285_v5, %v283_v4  ;;  %v293_v12 = vstv %s863_s7  ;;  %s948_s28 = sld [smem:[#allocation8 + $0x16]]  ;;  %s956_s30 = sld [smem:[#allocation8 + $0x17]] }
  0x50   :  { %v170_v2 = vadd.f32 %v169_v50, %v159_v57  ;;  %v296_v13 = vstv %s865_s8  ;;  %v556_v14 = vpop.eup %555  ;;  %v223_v15 = vstv %s869_s9  ;;  %v234_v16 = vstv %s871_s2  ;;  %s952_s29 = sld [smem:[#allocation3 + $0x1e]]  ;;  %s963_s7 = sld [smem:[#allocation3 + $0x1f]] }
  0x51   :  { %565 = vtanh.f32 %v275_v9  ;;  %v294_v17 = vmul.f32 %v293_v12, %v703_v0  ;;  %v213_v19 = vmul.f32 %v554_v6, %v212_v8  ;;  %v304_v20 = vstv %s876_s3  ;;  %s960_s6 = sld [smem:[#allocation6 + $0x1e]]  ;;  %s966_s8 = sld [smem:[#allocation8 + $0x18]] }
  0x52   :  { %v181_v10 = vadd.f32 %v180_v58, %v170_v2  ;;  %v307_v21 = vstv %s878_s10  ;;  %567 = vtanh.f32 %v286_v11  ;;  %v305_v24 = vmul.f32 %v304_v20, %v703_v0  ;;  %s970_s9 = sld [smem:[#allocation6 + $0x1f]]  ;;  %s974_s2 = sld [smem:[#allocation8 + $0x19]] }
  0x53   :  { %v558_v22 = vpop.eup %557  ;;  %v297_v23 = vadd.f32 %v296_v13, %v294_v17  ;;  %v315_v25 = vstv %s882_s11  ;;  %v224_v27 = vmul.f32 %v556_v14, %v223_v15  ;;  %v318_v29 = vstv %s886_s12  ;;  %s981_s3 = sld [smem:[#allocation8 + $0x1a]]  ;;  %s986_s10 = sld [smem:[#allocation8 + $0x1b]] }
  0x54   :  { %v192_v18 = vadd.f32 %v191_v3, %v181_v10  ;;  %v316_v28 = vmul.f32 %v315_v25, %v703_v0  ;;  %v560_v30 = vpop.eup %559  ;;  %v235_v31 = vmul.f32 %v558_v22, %v234_v16  ;;  %v245_v32 = vstv %s888_s13  ;;  %s991_s11 = sld [smem:[#allocation8 + $0x1c]]  ;;  %s516_s12 = sld [smem:[#allocation8 + $0x1d]] }
  0x55   :  { %569 = vtanh.f32 %v297_v23  ;;  %v308_v33 = vadd.f32 %v307_v21, %v305_v24  ;;  %v326_v36 = vstv %s894_s14  ;;  %v329_v37 = vstv %s896_s15  ;;  %s519_s13 = sld [smem:[#allocation8 + $0x1e]]  ;;  %s522_s14 = sld [smem:[#allocation8 + $0x1f]] }
  0x56   :  { %v203_v26 = vadd.f32 %v202_v7, %v192_v18  ;;  %v319_v35 = vadd.f32 %v318_v29, %v316_v28  ;;  %v256_v39 = vstv %s899_s16  ;;  %v327_v40 = vmul.f32 %v326_v36, %v703_v0  ;;  %s658_s15 = smov [#allocation9]  }
  0x57   :  { %v562_v38 = vpop.eup %561  ;;  %571 = vtanh.f32 %v308_v33  ;;  %v337_v41 = vstv %s901_s17  ;;  %v246_v43 = vmul.f32 %v560_v30, %v245_v32  ;;  %v267_v44 = vstv %s903_s18  ;;  %s420_s16 = sshll.u32 %s658_s15, 4  ;;  %s421_s16 = int_to_ptr.vmem [resolvable:$true] %s420_s16 }
  0x58   :  { %v214_v34 = vadd.f32 %v213_v19, %v203_v26  ;;  %v338_v45 = vmul.f32 %v337_v41, %v703_v0  ;;  %573 = vtanh.f32 %v319_v35  ;;  %v330_v47 = vadd.f32 %v329_v37, %v327_v40  ;;  %s627_s17 = scalar_lea.vmem %s421_s16, 128  ;;  %p632_p2 = scmp.lt.s32.totalorder %s421_s16, %s421_s16 }
  0x59   :  { %v564_v46 = vpop.eup %563  ;;  %v340_v48 = vstv %s910_s4  ;;  %v348_v49 = vstv %s912_s19  ;;  %v257_v51 = vmul.f32 %v562_v38, %v256_v39  ;;  %v278_v55 = vstv %s914_s20  ;;  %p628_p1 = scmp.ne.s32.totalorder %s421_s16, %s627_s17  ;;  %p633_p3 = scmp.lt.s32.totalorder %s627_s17, %s627_s17 }
  0x5a   :  { %v225_v42 = vadd.f32 %v224_v27, %v214_v34  ;;  %v341_v52 = vadd.f32 %v340_v48, %v338_v45  ;;  %v349_v53 = vmul.f32 %v348_v49, %v703_v0  ;;  %575 = vtanh.f32 %v330_v47 }
  0x5b   :  { %v566_v54 = vpop.eup %565  ;;  %v351_v56 = vstv %s920_s21  ;;  %v359_v57 = vstv %s922_s22  ;;  %v268_v59 = vmul.f32 %v564_v46, %v267_v44  ;;  %v289_v60 = vstv %s924_s23  ;;  %p634_p4 = por %p633_p3, %p632_p2 }
  0x5c   :  { %v236_v50 = vadd.f32 %v235_v31, %v225_v42  ;;  %v352_v61 = vadd.f32 %v351_v56, %v349_v53  ;;  %v568_v62 = vpop.eup %567  ;;  %v300_v63 = vstv %s929_s24  ;;  %577 = vtanh.f32 %v341_v52 }
  0x5d   :  { %v360_v1 = vmul.f32 %v359_v57, %v703_v0  ;;  %v362_v2 = vstv %s931_s25  ;;  %v279_v4 = vmul.f32 %v566_v54, %v278_v55  ;;  %v370_v5 = vstv %s935_s26  ;;  %p635_p5 = pnand %p634_p4, %p628_p1 }
  0x5e   :  { %v247_v58 = vadd.f32 %v246_v43, %v236_v50  ;;  %v373_v6 = vstv %s937_s1  ;;  %579 = vtanh.f32 %v352_v61  ;;  %v371_v9 = vmul.f32 %v370_v5, %v703_v0 }
  0x5f   :  { %v570_v7 = vpop.eup %569  ;;  %v363_v8 = vadd.f32 %v362_v2, %v360_v1  ;;  %v381_v10 = vstv %s942_s0  ;;  %v290_v12 = vmul.f32 %v568_v62, %v289_v60  ;;  %v384_v14 = vstv %s946_s27 }
  0x60   :  { %v258_v3 = vadd.f32 %v257_v51, %v247_v58  ;;  %v382_v13 = vmul.f32 %v381_v10, %v703_v0  ;;  %v311_v16 = vstv %s948_s28  ;;  %v374_v17 = vadd.f32 %v373_v6, %v371_v9 }
  0x61   :  { %v572_v15 = vpop.eup %571  ;;  %581 = vtanh.f32 %v363_v8  ;;  %v392_v18 = vstv %s952_s29  ;;  %v301_v20 = vmul.f32 %v570_v7, %v300_v63  ;;  %v322_v24 = vstv %s956_s30 }
  0x62   :  { %v269_v11 = vadd.f32 %v268_v59, %v258_v3  ;;  %v385_v21 = vadd.f32 %v384_v14, %v382_v13  ;;  %v393_v22 = vmul.f32 %v392_v18, %v703_v0  ;;  %v574_v23 = vpop.eup %573  ;;  %583 = vtanh.f32 %v374_v17 }
  0x63   :  { %v395_v25 = vstv %s960_s6  ;;  %v312_v27 = vmul.f32 %v572_v15, %v311_v16  ;;  %v403_v29 = vstv %s963_s7  ;;  %v333_v31 = vstv %s966_s8 }
  0x64   :  { %v280_v19 = vadd.f32 %v279_v4, %v269_v11  ;;  %v396_v28 = vadd.f32 %v395_v25, %v393_v22  ;;  %v576_v30 = vpop.eup %575  ;;  %585 = vtanh.f32 %v385_v21  ;;  %v404_v32 = vmul.f32 %v403_v29, %v703_v0 }
  0x65   :  { %v406_v33 = vstv %s970_s9  ;;  %v323_v35 = vmul.f32 %v574_v23, %v322_v24  ;;  %v344_v37 = vstv %s974_s2  ;;  %v334_v40 = vmul.f32 %v576_v30, %v333_v31 }
  0x66   :  { %v291_v26 = vadd.f32 %v290_v12, %v280_v19  ;;  %v578_v36 = vpop.eup %577  ;;  %587 = vtanh.f32 %v396_v28  ;;  %v407_v38 = vadd.f32 %v406_v33, %v404_v32  ;;  %v355_v42 = vstv %s981_s3 }
  0x67   :  { %v345_v44 = vmul.f32 %v578_v36, %v344_v37  ;;  %v366_v0 = vstv %s986_s10  ;;  %v377_v49 = vstv %s991_s11  ;;  %v388_v53 = vstv %s516_s12 }
  0x68   :  { %v302_v34 = vadd.f32 %v301_v20, %v291_v26  ;;  %v580_v41 = vpop.eup %579  ;;  %589 = vtanh.f32 %v407_v38  ;;  %v399_v57 = vstv %s519_s13  ;;  %v410_v61 = vstv %s522_s14 }
  0x69   :  { %v356_v47 = vmul.f32 %v580_v41, %v355_v42 }
  0x6a   :  { %v313_v39 = vadd.f32 %v312_v27, %v302_v34 }
  0x6b   :  { %v582_v45 = vpop.eup %581 }
  0x6c   :  { %v324_v43 = vadd.f32 %v323_v35, %v313_v39  ;;  %v584_v48 = vpop.eup %583  ;;  %v367_v51 = vmul.f32 %v582_v45, %v366_v0 }
  0x6d   :  { %v378_v55 = vmul.f32 %v584_v48, %v377_v49 }
  0x6e   :  { %v335_v46 = vadd.f32 %v334_v40, %v324_v43  ;;  %v586_v52 = vpop.eup %585 }
  0x6f   :  { %v389_v59 = vmul.f32 %v586_v52, %v388_v53 }
  0x70   :  { %v346_v50 = vadd.f32 %v345_v44, %v335_v46  ;;  %v588_v56 = vpop.eup %587 }
  0x71   :  { %v400_v63 = vmul.f32 %v588_v56, %v399_v57 }
  0x72   :  { %v357_v54 = vadd.f32 %v356_v47, %v346_v50  ;;  %v590_v60 = vpop.eup %589 }
  0x73   :  { %v411_v2 = vmul.f32 %v590_v60, %v410_v61 }
  0x74   :  { %v368_v58 = vadd.f32 %v367_v51, %v357_v54 }
  0x76   :  { %v379_v62 = vadd.f32 %v378_v55, %v368_v58 }
  0x78   :  { %v390_v1 = vadd.f32 %v389_v59, %v379_v62 }
  0x7a   :  { %v401_v3 = vadd.f32 %v400_v63, %v390_v1 }
  0x7c   :  { %v412_v4 = vadd.f32 %v411_v2, %v401_v3 }
  0x7e   :  { %413 = vst [vmem:[#allocation9] sm:$0xff] %v412_v4 }
  0x7f   :  { %638 = shalt.err (!%p635_p5)
}
  0x80   :  { %s639_s19 = scalar_lea.hbm %s1016_s5, 128 }
  0x81   :  { %p640_p6 = scmp.ne.s32.totalorder %s1016_s5, %s639_s19  ;;  %p643_p7 = scmp.lt.u32.totalorder %s639_s19, %s1016_s5 }
  0x83   :  { %p645_p8 = pnand %p643_p7, %p640_p6 }
  0x85   :  { %648 = shalt.err (!%p645_p8)
}
  0x86   :  { %423 = dma.vmem_to_hbm [thread:$0]  %s421_s16, 128, %s1016_s5, [#allocation4]  }
  0x87   :  { %653 = dma.done.wait [#allocation4], 128  }
  0x88   :  { %654 = vsyncadd [#allocation4], 4294967168 }
  0x89   :  { %427 = vsyncpa [#allocation4], 1 }
  0x8a   :  { %428 = vsyncpa [#allocation5], 1 }
  0x8b   :  { %429 = vsyncpa [#allocation7], 1 }

</bundles_post_ra>
